<compile_context>
chip_gen: v7x
topology: tpu7x:2x2x1
jax: 0.10.0
libtpu: 0.0.40
codegen_flags: <defaults>
</compile_context>

<pallas_src>
import functools

import jax
import jax.numpy as jnp
from jax.experimental import pallas as pl
from jax.experimental.pallas import tpu as pltpu


def _round_up(x, m):
    return ((x + m - 1) // m) * m


# ----------------------------------------------------------------------------
# Glue: im2col (3x3, stride 1, pad 1) on NHWC.
# ----------------------------------------------------------------------------
def im2col_3x3(x_nchw):
    B, C, H, W = x_nchw.shape
    x = jnp.transpose(x_nchw, (0, 2, 3, 1))                  # NCHW -> NHWC
    xp = jnp.pad(x, ((0, 0), (1, 1), (1, 1), (0, 0)))
    slabs = [xp[:, dy:dy + H, dx:dx + W, :]
             for dy in range(3) for dx in range(3)]
    patches = jnp.concatenate(slabs, axis=-1)                # [B, H, W, 9*C]
    return patches.reshape(B, H * W, 9 * C)


# ----------------------------------------------------------------------------
# Fused kernel: backbone matmul + ReLU + MXU global-avg-pool, then on the last
# row tile of each image the full CBM head (proj -> normalize -> final linear).
# ----------------------------------------------------------------------------
def _cbm_fused_kernel(patches_ref, wconv_ref, bconv_ref, wc_ref, mean_ref,
                      inv_std_ref, wg_ref, bg_ref,
                      logits_ref, projc_ref, acc_ref, *, inv_hw):
    t = pl.program_id(1)

    @pl.when(t == 0)
    def _init():
        acc_ref[...] = jnp.zeros_like(acc_ref)

    # Backbone hot path: (TILE_M, CKKp) @ (CKKp, Fp), bf16 in, f32 accumulate.
    act = jnp.dot(patches_ref[...], wconv_ref[...],
                  preferred_element_type=jnp.float32)
    act = jnp.maximum(act + bconv_ref[...], 0.0)             # bias + ReLU (f32 VPU)

    # Global average pool as an MXU reduction: (1, TILE_M) @ (TILE_M, Fp).
    tm = act.shape[0]
    pool = jnp.full((1, tm), inv_hw, dtype=jnp.float32)
    acc_ref[...] += jnp.dot(pool, act, preferred_element_type=jnp.float32)

    # Fused CBM head on the last row tile of this image.
    @pl.when(t == pl.num_programs(1) - 1)
    def _head():
        feats = acc_ref[...]                                 # (1, Fp) f32
        proj = jnp.dot(feats, wc_ref[...], preferred_element_type=jnp.float32)
        proj_c = (proj - mean_ref[...]) * inv_std_ref[...]
        projc_ref[...] = proj_c
        logits_ref[...] = (
            jnp.dot(proj_c, wg_ref[...], preferred_element_type=jnp.float32)
            + bg_ref[...])


def cbm_forward(x_nchw, params, *, tile_m=256):
    B, C, H, W = x_nchw.shape
    HW = H * W
    F = params["w_conv"].shape[1]
    Nc = params["W_c"].shape[0]
    Ncls = params["W_g"].shape[0]
    CKK = 9 * C

    # Lane-dense padded extents (multiples of 128 on every last dim).
    CKKp = _round_up(CKK, 128)
    Fp = _round_up(F, 128)
    Ncp = _round_up(Nc, 128)
    Nclsp = _round_up(Ncls, 128)

    # Row tile over the folded (B*HW) matmul M dimension.
    tm = tile_m if HW % tile_m == 0 else HW
    T = HW // tm

    # --- pad + cast operands (zero padding keeps the math exact) -------------
    patches = im2col_3x3(x_nchw)                                      # f32
    patches = jnp.pad(patches, ((0, 0), (0, 0), (0, CKKp - CKK)))
    patches2d = patches.reshape(B * HW, CKKp).astype(jnp.bfloat16)

    w_conv = jnp.pad(params["w_conv"],
                     ((0, CKKp - CKK), (0, Fp - F))).astype(jnp.bfloat16)
    b_conv = jnp.pad(params["b_conv"].reshape(1, F), ((0, 0), (0, Fp - F)))
    wc_t = jnp.pad(params["W_c"].T, ((0, Fp - F), (0, Ncp - Nc)))
    mean = jnp.pad(params["proj_mean"].reshape(1, Nc), ((0, 0), (0, Ncp - Nc)))
    inv_std = jnp.pad((1.0 / params["proj_std"]).reshape(1, Nc),
                      ((0, 0), (0, Ncp - Nc)), constant_values=1.0)
    wg_t = jnp.pad(params["W_g"].T, ((0, Ncp - Nc), (0, Nclsp - Ncls)))
    b_g = jnp.pad(params["b_g"].reshape(1, Ncls), ((0, 0), (0, Nclsp - Ncls)))

    flops = (2 * B * HW * CKKp * Fp            # backbone matmul
             + 2 * B * HW * Fp                 # pooling matmul
             + 2 * B * (Fp * Ncp + Ncp * Nclsp))
    bytes_accessed = (patches2d.size * 2 + w_conv.size * 2
                      + (b_conv.size + wc_t.size + mean.size + inv_std.size
                         + wg_t.size + b_g.size) * 4
                      + B * (Ncp + Nclsp) * 4)

    kernel = functools.partial(_cbm_fused_kernel, inv_hw=1.0 / HW)

    logits_p, projc_p = pl.pallas_call(
        kernel,
        out_shape=(jax.ShapeDtypeStruct((B, 1, Nclsp), jnp.float32),
                   jax.ShapeDtypeStruct((B, 1, Ncp), jnp.float32)),
        grid_spec=pltpu.PrefetchScalarGridSpec(
            num_scalar_prefetch=0,
            grid=(B, T),
            in_specs=[
                pl.BlockSpec((tm, CKKp), lambda b, t: (b * T + t, 0)),
                pl.BlockSpec((CKKp, Fp), lambda b, t: (0, 0)),
                pl.BlockSpec((1, Fp), lambda b, t: (0, 0)),
                pl.BlockSpec((Fp, Ncp), lambda b, t: (0, 0)),
                pl.BlockSpec((1, Ncp), lambda b, t: (0, 0)),
                pl.BlockSpec((1, Ncp), lambda b, t: (0, 0)),
                pl.BlockSpec((Ncp, Nclsp), lambda b, t: (0, 0)),
                pl.BlockSpec((1, Nclsp), lambda b, t: (0, 0)),
            ],
            out_specs=[
                pl.BlockSpec((None, 1, Nclsp), lambda b, t: (b, 0, 0)),
                pl.BlockSpec((None, 1, Ncp), lambda b, t: (b, 0, 0)),
            ],
            scratch_shapes=[pltpu.VMEM((1, Fp), jnp.float32)],
        ),
        compiler_params=pltpu.CompilerParams(
            dimension_semantics=("parallel", "arbitrary"),
            vmem_limit_bytes=32 * 1024 * 1024),
        cost_estimate=pl.CostEstimate(flops=flops, transcendentals=0,
                                      bytes_accessed=bytes_accessed),
    )(patches2d, w_conv, b_conv, wc_t, mean, inv_std, wg_t, b_g)

    logits = logits_p.reshape(B, Nclsp)[:, :Ncls]
    proj_c = projc_p.reshape(B, Ncp)[:, :Nc]
    return logits, proj_c


def reference_forward(x_nchw, params):
    """Pure-JAX f32 reference for correctness check."""
    patches = im2col_3x3(x_nchw)
    act = jnp.maximum(patches @ params["w_conv"] + params["b_conv"], 0.0)
    feats = jnp.mean(act, axis=1)
    proj = feats @ params["W_c"].T
    proj_c = (proj - params["proj_mean"]) / params["proj_std"]
    logits = proj_c @ params["W_g"].T + params["b_g"]
    return logits, proj_c


if __name__ == "__main__":
    # Small shapes consistent with the module's forward.
    B, C, H, W = 2, 4, 16, 16        # input images (NCHW)
    F_backbone = 16                  # backbone feature dim after flatten
    N_concepts = 32                  # W_c.shape[0]
    N_classes = 10                   # W_g.shape[0]

    key = jax.random.PRNGKey(0)
    ks = jax.random.split(key, 8)

    params = {
        "w_conv": jax.random.normal(ks[0], (9 * C, F_backbone), jnp.float32) * 0.1,
        "b_conv": jax.random.normal(ks[1], (1, F_backbone), jnp.float32) * 0.1,
        "W_c": jax.random.normal(ks[2], (N_concepts, F_backbone), jnp.float32) * 0.1,
        "proj_mean": jax.random.normal(ks[3], (N_concepts,), jnp.float32) * 0.1,
        "proj_std": jax.random.uniform(ks[4], (N_concepts,), jnp.float32,
                                       minval=0.5, maxval=1.5),
        "W_g": jax.random.normal(ks[5], (N_classes, N_concepts), jnp.float32) * 0.1,
        "b_g": jax.random.normal(ks[6], (N_classes,), jnp.float32) * 0.1,
    }
    x = jax.random.normal(ks[7], (B, C, H, W), jnp.float32)

    logits, proj_c = jax.jit(cbm_forward)(x, params)
    jax.block_until_ready((logits, proj_c))

    ref_logits, ref_proj_c = reference_forward(x, params)
    assert logits.shape == (B, N_classes) and proj_c.shape == (B, N_concepts)
    # bf16 inputs on the backbone matmul -> slightly relaxed tolerance.
    assert jnp.allclose(logits, ref_logits, atol=2e-2, rtol=2e-2)
    assert jnp.allclose(proj_c, ref_proj_c, atol=2e-2, rtol=2e-2)

    print("KERNEL_OK")
</pallas_src>

<mosaic_0001>
module attributes {stable_mosaic.version = 11 : i64} {
  func.func @_cbm_fused_kernel(%arg0: i32, %arg1: i32, %arg2: memref<256x128xbf16, #tpu.memory_space<vmem>>, %arg3: memref<128x128xbf16, #tpu.memory_space<vmem>>, %arg4: memref<1x128xf32, #tpu.memory_space<vmem>>, %arg5: memref<128x128xf32, #tpu.memory_space<vmem>>, %arg6: memref<1x128xf32, #tpu.memory_space<vmem>>, %arg7: memref<1x128xf32, #tpu.memory_space<vmem>>, %arg8: memref<128x128xf32, #tpu.memory_space<vmem>>, %arg9: memref<1x128xf32, #tpu.memory_space<vmem>>, %arg10: memref<1x1x128xf32, #tpu.memory_space<vmem>>, %arg11: memref<1x1x128xf32, #tpu.memory_space<vmem>>, %arg12: memref<1x128xf32, #tpu.memory_space<vmem>>) attributes {dimension_semantics = [#tpu.dimension_semantics<parallel>, #tpu.dimension_semantics<arbitrary>], iteration_bounds = array<i64: 2, 1>, scalar_prefetch = 0 : i64, scratch_operands = 1 : i64, tpu.core_type = #tpu.core_type<tc>, window_params = [{transform_indices = @transform_0, window_bounds = array<i64: 256, 128>}, {pipeline_mode = #tpu.pipeline_mode<synchronous>, transform_indices = @transform_1, window_bounds = array<i64: 128, 128>}, {pipeline_mode = #tpu.pipeline_mode<synchronous>, transform_indices = @transform_2, window_bounds = array<i64: 1, 128>}, {pipeline_mode = #tpu.pipeline_mode<synchronous>, transform_indices = @transform_3, window_bounds = array<i64: 128, 128>}, {pipeline_mode = #tpu.pipeline_mode<synchronous>, transform_indices = @transform_4, window_bounds = array<i64: 1, 128>}, {pipeline_mode = #tpu.pipeline_mode<synchronous>, transform_indices = @transform_5, window_bounds = array<i64: 1, 128>}, {pipeline_mode = #tpu.pipeline_mode<synchronous>, transform_indices = @transform_6, window_bounds = array<i64: 128, 128>}, {pipeline_mode = #tpu.pipeline_mode<synchronous>, transform_indices = @transform_7, window_bounds = array<i64: 1, 128>}, {transform_indices = @transform_8, window_bounds = array<i64: 1, 1, 128>}, {transform_indices = @transform_9, window_bounds = array<i64: 1, 1, 128>}]} {
    %c0_i32 = arith.constant 0 : i32
    %0 = arith.cmpi eq, %arg1, %c0_i32 : i32
    %1 = arith.extui %0 : i1 to i32
    %c0_i32_0 = arith.constant 0 : i32
    %2 = arith.cmpi ne, %1, %c0_i32_0 : i32
    scf.if %2 {
      %cst_15 = arith.constant 0.000000e+00 : f32
      %19 = vector.broadcast %cst_15 : f32 to vector<1x128xf32>
      %c0_16 = arith.constant 0 : index
      %c0_17 = arith.constant 0 : index
      %20 = vector.load %arg12[%c0_16, %c0_17] : memref<1x128xf32, #tpu.memory_space<vmem>>, vector<1x128xf32>
      tpu.vector_store %arg12[%c0_16, %c0_17], %19 {strides = array<i32>} : memref<1x128xf32, #tpu.memory_space<vmem>>, vector<1x128xf32>,
    } else {
    }
    %c0 = arith.constant 0 : index
    %c0_1 = arith.constant 0 : index
    %3 = vector.load %arg2[%c0, %c0_1] : memref<256x128xbf16, #tpu.memory_space<vmem>>, vector<256x128xbf16>
    %c0_2 = arith.constant 0 : index
    %c0_3 = arith.constant 0 : index
    %4 = vector.load %arg3[%c0_2, %c0_3] : memref<128x128xbf16, #tpu.memory_space<vmem>>, vector<128x128xbf16>
    %cst = arith.constant dense<0.000000e+00> : vector<256x128xf32>
    %5 = tpu.matmul %3, %4, %cst {dimension_numbers = #tpu.dot_dimension_numbers<[1], [0], [0], [1], [0, 0, 1, 1], [], []>} : vector<256x128xbf16>, vector<128x128xbf16>, vector<256x128xf32> -> vector<256x128xf32>
    %c0_4 = arith.constant 0 : index
    %c0_5 = arith.constant 0 : index
    %6 = vector.load %arg4[%c0_4, %c0_5] : memref<1x128xf32, #tpu.memory_space<vmem>>, vector<1x128xf32>
    %7 = vector.broadcast %6 : vector<1x128xf32> to vector<256x128xf32>
    %8 = arith.addf %5, %7 : vector<256x128xf32>
    %cst_6 = arith.constant 0.000000e+00 : f32
    %9 = vector.broadcast %cst_6 : f32 to vector<256x128xf32>
    %10 = arith.maximumf %8, %9 : vector<256x128xf32>
    %cst_7 = arith.constant 3.906250e-03 : f32
    %11 = vector.broadcast %cst_7 : f32 to vector<1x256xf32>
    %c0_8 = arith.constant 0 : index
    %c0_9 = arith.constant 0 : index
    %12 = vector.load %arg12[%c0_8, %c0_9] : memref<1x128xf32, #tpu.memory_space<vmem>>, vector<1x128xf32>
    %cst_10 = arith.constant dense<0.000000e+00> : vector<1x128xf32>
    %13 = tpu.matmul %11, %10, %cst_10 {dimension_numbers = #tpu.dot_dimension_numbers<[1], [0], [0], [1], [0, 0, 1, 1], [], []>} : vector<1x256xf32>, vector<256x128xf32>, vector<1x128xf32> -> vector<1x128xf32>
    %14 = arith.addf %12, %13 : vector<1x128xf32>
    %c0_11 = arith.constant 0 : index
    %c0_12 = arith.constant 0 : index
    %15 = vector.load %arg12[%c0_11, %c0_12] : memref<1x128xf32, #tpu.memory_space<vmem>>, vector<1x128xf32>
    tpu.vector_store %arg12[%c0_11, %c0_12], %14 {strides = array<i32>} : memref<1x128xf32, #tpu.memory_space<vmem>>, vector<1x128xf32>,
    %c0_i32_13 = arith.constant 0 : i32
    %16 = arith.cmpi eq, %arg1, %c0_i32_13 : i32
    %17 = arith.extui %16 : i1 to i32
    %c0_i32_14 = arith.constant 0 : i32
    %18 = arith.cmpi ne, %17, %c0_i32_14 : i32
    scf.if %18 {
      %c0_15 = arith.constant 0 : index
      %c0_16 = arith.constant 0 : index
      %19 = vector.load %arg12[%c0_15, %c0_16] : memref<1x128xf32, #tpu.memory_space<vmem>>, vector<1x128xf32>
      %c0_17 = arith.constant 0 : index
      %c0_18 = arith.constant 0 : index
      %20 = vector.load %arg5[%c0_17, %c0_18] : memref<128x128xf32, #tpu.memory_space<vmem>>, vector<128x128xf32>
      %cst_19 = arith.constant dense<0.000000e+00> : vector<1x128xf32>
      %21 = tpu.matmul %19, %20, %cst_19 {dimension_numbers = #tpu.dot_dimension_numbers<[1], [0], [0], [1], [0, 0, 1, 1], [], []>} : vector<1x128xf32>, vector<128x128xf32>, vector<1x128xf32> -> vector<1x128xf32>
      %c0_20 = arith.constant 0 : index
      %c0_21 = arith.constant 0 : index
      %22 = vector.load %arg6[%c0_20, %c0_21] : memref<1x128xf32, #tpu.memory_space<vmem>>, vector<1x128xf32>
      %23 = arith.subf %21, %22 : vector<1x128xf32>
      %c0_22 = arith.constant 0 : index
      %c0_23 = arith.constant 0 : index
      %24 = vector.load %arg7[%c0_22, %c0_23] : memref<1x128xf32, #tpu.memory_space<vmem>>, vector<1x128xf32>
      %25 = arith.mulf %23, %24 : vector<1x128xf32>
      %c0_24 = arith.constant 0 : index
      %c0_25 = arith.constant 0 : index
      %c0_26 = arith.constant 0 : index
      %26 = vector.load %arg11[%c0_24, %c0_25, %c0_26] : memref<1x1x128xf32, #tpu.memory_space<vmem>>, vector<1x1x128xf32>
      %27 = vector.shape_cast %26 : vector<1x1x128xf32> to vector<1x128xf32>
      %28 = vector.shape_cast %25 : vector<1x128xf32> to vector<1x1x128xf32>
      tpu.vector_store %arg11[%c0_24, %c0_25, %c0_26], %28 {strides = array<i32>} : memref<1x1x128xf32, #tpu.memory_space<vmem>>, vector<1x1x128xf32>,
      %c0_27 = arith.constant 0 : index
      %c0_28 = arith.constant 0 : index
      %29 = vector.load %arg8[%c0_27, %c0_28] : memref<128x128xf32, #tpu.memory_space<vmem>>, vector<128x128xf32>
      %cst_29 = arith.constant dense<0.000000e+00> : vector<1x128xf32>
      %30 = tpu.matmul %25, %29, %cst_29 {dimension_numbers = #tpu.dot_dimension_numbers<[1], [0], [0], [1], [0, 0, 1, 1], [], []>} : vector<1x128xf32>, vector<128x128xf32>, vector<1x128xf32> -> vector<1x128xf32>
      %c0_30 = arith.constant 0 : index
      %c0_31 = arith.constant 0 : index
      %31 = vector.load %arg9[%c0_30, %c0_31] : memref<1x128xf32, #tpu.memory_space<vmem>>, vector<1x128xf32>
      %32 = arith.addf %30, %31 : vector<1x128xf32>
      %c0_32 = arith.constant 0 : index
      %c0_33 = arith.constant 0 : index
      %c0_34 = arith.constant 0 : index
      %33 = vector.load %arg10[%c0_32, %c0_33, %c0_34] : memref<1x1x128xf32, #tpu.memory_space<vmem>>, vector<1x1x128xf32>
      %34 = vector.shape_cast %33 : vector<1x1x128xf32> to vector<1x128xf32>
      %35 = vector.shape_cast %32 : vector<1x128xf32> to vector<1x1x128xf32>
      tpu.vector_store %arg10[%c0_32, %c0_33, %c0_34], %35 {strides = array<i32>} : memref<1x1x128xf32, #tpu.memory_space<vmem>>, vector<1x1x128xf32>,
    } else {
    }
    return
  }
  func.func @transform_0(%arg0: i32, %arg1: i32) -> (i32, i32) {
    %c1_i32 = arith.constant 1 : i32
    %0 = arith.muli %arg0, %c1_i32 : i32
    %1 = arith.addi %0, %arg1 : i32
    %c0_i32 = arith.constant 0 : i32
    %c0_i32_0 = arith.constant 0 : i32
    return %1, %c0_i32 : i32, i32
  }
  func.func @transform_1(%arg0: i32, %arg1: i32) -> (i32, i32) {
    %c0_i32 = arith.constant 0 : i32
    %c0_i32_0 = arith.constant 0 : i32
    %c0_i32_1 = arith.constant 0 : i32
    return %c0_i32, %c0_i32_0 : i32, i32
  }
  func.func @transform_2(%arg0: i32, %arg1: i32) -> (i32, i32) {
    %c0_i32 = arith.constant 0 : i32
    %c0_i32_0 = arith.constant 0 : i32
    %c0_i32_1 = arith.constant 0 : i32
    return %c0_i32, %c0_i32_0 : i32, i32
  }
  func.func @transform_3(%arg0: i32, %arg1: i32) -> (i32, i32) {
    %c0_i32 = arith.constant 0 : i32
    %c0_i32_0 = arith.constant 0 : i32
    %c0_i32_1 = arith.constant 0 : i32
    return %c0_i32, %c0_i32_0 : i32, i32
  }
  func.func @transform_4(%arg0: i32, %arg1: i32) -> (i32, i32) {
    %c0_i32 = arith.constant 0 : i32
    %c0_i32_0 = arith.constant 0 : i32
    %c0_i32_1 = arith.constant 0 : i32
    return %c0_i32, %c0_i32_0 : i32, i32
  }
  func.func @transform_5(%arg0: i32, %arg1: i32) -> (i32, i32) {
    %c0_i32 = arith.constant 0 : i32
    %c0_i32_0 = arith.constant 0 : i32
    %c0_i32_1 = arith.constant 0 : i32
    return %c0_i32, %c0_i32_0 : i32, i32
  }
  func.func @transform_6(%arg0: i32, %arg1: i32) -> (i32, i32) {
    %c0_i32 = arith.constant 0 : i32
    %c0_i32_0 = arith.constant 0 : i32
    %c0_i32_1 = arith.constant 0 : i32
    return %c0_i32, %c0_i32_0 : i32, i32
  }
  func.func @transform_7(%arg0: i32, %arg1: i32) -> (i32, i32) {
    %c0_i32 = arith.constant 0 : i32
    %c0_i32_0 = arith.constant 0 : i32
    %c0_i32_1 = arith.constant 0 : i32
    return %c0_i32, %c0_i32_0 : i32, i32
  }
  func.func @transform_8(%arg0: i32, %arg1: i32) -> (i32, i32, i32) {
    %c0_i32 = arith.constant 0 : i32
    %c0_i32_0 = arith.constant 0 : i32
    %c0_i32_1 = arith.constant 0 : i32
    return %arg0, %c0_i32, %c0_i32_0 : i32, i32, i32
  }
  func.func @transform_9(%arg0: i32, %arg1: i32) -> (i32, i32, i32) {
    %c0_i32 = arith.constant 0 : i32
    %c0_i32_0 = arith.constant 0 : i32
    %c0_i32_1 = arith.constant 0 : i32
    return %arg0, %c0_i32, %c0_i32_0 : i32, i32, i32
  }
}

</mosaic_0001>

<bundles_post_ra>
// kernel: cbm_forward.1
= control target key start
LH: loop header
LB: loop body
LE: loop exit
PB: predicated region body
PF: predicated region fallthrough
CT: control target
= control target key end

     0   :  { %s2088_s0 = inlined_call_operand.vmem [shape: bf16[512,128], index: 0, kind: input, shape index: {}]   ;;  %s2089_s1 = inlined_call_operand.vmem [shape: bf16[128,128], index: 1, kind: input, shape index: {}]   ;;  %s2090_s2 = inlined_call_operand.vmem [shape: f32[1,128], index: 2, kind: input, shape index: {}]   ;;  %s2091_s3 = inlined_call_operand.vmem [shape: f32[128,128], index: 3, kind: input, shape index: {}]   ;;  %s2092_s4 = inlined_call_operand.vmem [shape: f32[1,128], index: 4, kind: input, shape index: {}]   ;;  %s2093_s5 = inlined_call_operand.vmem [shape: f32[1,128], index: 5, kind: input, shape index: {}]   ;;  %s2094_s6 = inlined_call_operand.vmem [shape: f32[128,128], index: 6, kind: input, shape index: {}]   ;;  %s2095_s7 = inlined_call_operand.vmem [shape: f32[1,128], index: 7, kind: input, shape index: {}]   ;;  %s2096_s8 = inlined_call_operand.hbm [shape: f32[2,1,128], index: 8, kind: output, shape index: {0}]   ;;  %s2097_s9 = inlined_call_operand.hbm [shape: f32[2,1,128], index: 9, kind: output, shape index: {1}]  }
   0x1   :  { %2099 = sst [smem:[#allocation9_spill]] %s2088_s0 }
   0x2   :  { %15 = vsyncpa [#allocation4], 0 }
   0x3   :  { %17 = vsyncpa [#allocation4 + $0x1], 0 }
   0x4   :  { %18 = vsyncpa [#allocation6], 0 }
   0x5   :  { %20 = vsyncpa [#allocation6 + $0x1], 0  ;;  %s1719_s30 = smov 0   ;;  %s1721_s10 = smov 0  }
   0x6   :  { %s1723_s11 = smov 0   ;;  %s1725_s12 = smov 0  }
   0x7   :  { %s1727_s13 = smov 0   ;;  %s1729_s14 = smov 0  }
   0x8 LB: > { %s1136_s15 = sadd.s32 4294967295, %s1661_s14   ;;  %s1137_s16 = sadd.s32 4294967294, %s1661_s14   ;;  %s1661_s14 = sphi %s1729_s14, %s26_s14   ;;  %s1657_s13 = sphi %s1727_s13, %s2108_s13   ;;  %s1653_s12 = sphi %s1725_s12, %s2107_s12   ;;  %s1649_s11 = sphi %s1723_s11, %s2106_s11   ;;  %s1645_s10 = sphi %s1721_s10, %s2105_s10   ;;  %s1641_s30 = sphi %s1719_s30, %s2104_s30  }
   0x9   : > { %s38_s17 = sadd.s32 1, %s1657_s13  ;;  %s220_s18 = sadd.s32 1, %s1649_s11 }
   0xa   : > { %p40_p0 = scmp.ge.s32.totalorder %s38_s17, 2  ;;  %p230_p1 = scmp.ne.s32.totalorder %s1649_s11, %s1645_s10 }
   0xb   : > { %p231_p2 = scmp.eq.s32.totalorder %s1136_s15, 1  ;;  %p236_p3 = scmp.ne.s32.totalorder %s1645_s10, %s1641_s30 }
   0xc   : > { %s2110_s17 = smov (%p40_p0, %s38_s17), 0  ;;  %p237_p5 = scmp.eq.s32.totalorder %s1137_s16, 1 }
   0xd   : > { %p1759_p4 = por %p231_p2, %p230_p1  ;;  %s217_s20 = ssub.s32 %s1657_s13, %s2110_s17 }
   0xe   : > { %p1140_p6 = scmp.ge.s32.totalorder %s1661_s14, 1  ;;  %p218_p7 = scmp.eq.s32.totalorder %s217_s20, 0 }
   0xf   : > { %p1766_p8 = por %p237_p5, %p236_p3  ;;  %p313_p9 = scmp.lt.s32.totalorder %s1661_s14, 3 }
  0x10   : > { %s1772_s22 = scalar_select %p218_p7, %s1649_s11, %s220_s18  }
  0x11   : > { %p314_p10 = pnand %p1140_p6, %p313_p9 }
  0x12   : > { %v1527_v0 = vld [vmem:[%s2089_s1] sm:$0xff] (!%p314_p10)   ;;  %s1141_s25 = sshll.u32 (!%p314_p10), %s1653_s12, 5  ;;  %v1528_v1 = vld [vmem:[%s2089_s1 + $0x8] sm:$0xff] (!%p314_p10)   ;;  %v1529_v2 = vld [vmem:[%s2089_s1 + $0x10] sm:$0xff] (!%p314_p10)   ;;  %s2102_s0 = sld [smem:[#allocation9_spill]] (!%p314_p10)  ;;  %v1663_v24 = vmov (!%p314_p10), 0.00390625  }
  0x13   : > { %317 = sbr.rel (%p314_p10) target bundleno = 1005 (0x3ed), region = 52  ;;  %p355_p11 = scmp.lt.s32.totalorder (!%p314_p10), %s1141_s25, 63  ;;  %1265 = vmatprep.subr.bf16.mxu0 (!%p314_p10), %v1527_v0  ;;  %v1530_v3 = vld [vmem:[%s2089_s1 + $0x18] sm:$0xff] (!%p314_p10)   ;;  %v1531_v5 = vld [vmem:[%s2089_s1 + $0x20] sm:$0xff] (!%p314_p10)   ;;  %v1532_v6 = vld [vmem:[%s2089_s1 + $0x28] sm:$0xff] (!%p314_p10)   ;;  %824 = vmatprep.mubr.f32.mxu1 (!%p314_p10), %v1663_v24  ;;  %v1664_v25 = vmov (!%p314_p10), 0.0|0.0  }
  0x14   : > { %1266 = vmatpush3.bf16.msra.mxu0 (!%p314_p10), %v1527_v0  ;;  %v1533_v7 = vld [vmem:[%s2089_s1 + $0x30] sm:$0xff] (!%p314_p10)   ;;  %v1534_v8 = vld [vmem:[%s2089_s1 + $0x38] sm:$0xff] (!%p314_p10)   ;;  %v1825_v26 = vld [vmem:[%s2090_s2] ss:$0 sm:$0xff] (!%p314_p10)  ;;  %vm1666_vm0 = vmmov (!%p314_p10), 0   ;;  %s2098_s28 = sshll.u32 (!%p314_p10), %s1653_s12, 4 }
  0x15   : > { %1267 = vmatprep.subr.bf16.mxu0 (!%p314_p10), %v1528_v1  ;;  %s2011_s16 = scalar_lea.hbm (!%p314_p10), %s2097_s9, %s2098_s28  ;;  %s1667_s26 = smov (!%p314_p10), [#allocation5]  }
  0x18   : > { %1268 = vmatpush3.bf16.msra.mxu0 (!%p314_p10), %v1528_v1 }
  0x19   : > { %1269 = vmatprep.subr.bf16.mxu0 (!%p314_p10), %v1529_v2 }
  0x1a   : > { %s2112_s25 = smov (!%p355_p11, %s1141_s25), 63 }
  0x1b   : > { %s1142_s15 = sshll.u32 %s2112_s25, 2  ;;  %s1555_s25 = sshll.u32 %s1667_s26, 4  ;;  %s1556_s25 = int_to_ptr.vmem [resolvable:$false] %s1555_s25 }
  0x1c   : > { %s1787_s20 = scalar_lea.vmem %s2102_s0, %s1142_s15  ;;  %1270 = vmatpush3.bf16.msra.mxu0 %v1529_v2  ;;  %s1557_s0 = scalar_lea.vmem %s1556_s25, 32 }
  0x1d   : > { %v1535_v4 = vld [vmem:[%s1787_s20] sm:$0xff]   ;;  %1271 = vmatprep.subr.bf16.mxu0 %v1530_v3  ;;  %v1536_v9 = vld [vmem:[%s1787_s20 + $0x8] sm:$0xff]   ;;  %v1537_v10 = vld [vmem:[%s1787_s20 + $0x10] sm:$0xff]  }
  0x1e   : > { %1281 = vmatprep.mubr.bf16.mxu0 %v1535_v4  ;;  %v1538_v11 = vld [vmem:[%s1787_s20 + $0x18] sm:$0xff]   ;;  %v1539_v12 = vld [vmem:[%s1787_s20 + $0x20] sm:$0xff]   ;;  %v1540_v13 = vld [vmem:[%s1787_s20 + $0x28] sm:$0xff]  }
  0x1f   : > { %v1541_v14 = vld [vmem:[%s1787_s20 + $0x30] sm:$0xff]   ;;  %v1542_v15 = vld [vmem:[%s1787_s20 + $0x38] sm:$0xff]   ;;  %v1543_v16 = vld [vmem:[%s1787_s20 + $0x40] sm:$0xff]  }
  0x20   : > { %1272 = vmatpush3.bf16.msra.mxu0 %v1530_v3  ;;  %v1544_v17 = vld [vmem:[%s1787_s20 + $0x48] sm:$0xff]   ;;  %v1545_v18 = vld [vmem:[%s1787_s20 + $0x50] sm:$0xff]   ;;  %v1546_v19 = vld [vmem:[%s1787_s20 + $0x58] sm:$0xff]  }
  0x21   : > { %1273 = vmatprep.subr.bf16.mxu0 %v1531_v5  ;;  %v1547_v20 = vld [vmem:[%s1787_s20 + $0x60] sm:$0xff]   ;;  %v1548_v21 = vld [vmem:[%s1787_s20 + $0x68] sm:$0xff]   ;;  %v1549_v22 = vld [vmem:[%s1787_s20 + $0x70] sm:$0xff]  }
  0x22   : > { %v1550_v23 = vld [vmem:[%s1787_s20 + $0x78] sm:$0xff]   ;;  %s1999_s20 = sand.u32 1, %s1645_s10  }
  0x23   : > { %s352_s27 = scalar_lea.vmem [#allocation5], %s1999_s20  ;;  %s1020_s23 = scalar_lea.sflag [#allocation6], %s1999_s20 }
  0x24   : > { %1274 = vmatpush3.bf16.msra.mxu0 %v1531_v5  ;;  %s1045_s18 = sshll.u32 %s352_s27, 4  ;;  %s1046_s18 = int_to_ptr.vmem [resolvable:$true] %s1045_s18 }
  0x25   : > { %1275 = vmatprep.subr.bf16.mxu0 %v1532_v6  ;;  %s1551_s24 = scalar_lea.vmem %s1046_s18, 16  ;;  %p1558_p1 = scmp.lt.s32.totalorder %s1046_s18, %s1556_s25 }
  0x26   : > { %p1552_p12 = scmp.ne.s32.totalorder %s1046_s18, %s1551_s24  ;;  %p1559_p2 = scmp.lt.s32.totalorder %s1557_s0, %s1551_s24 }
  0x28   : > { %1276 = vmatpush3.bf16.msra.mxu0 %v1532_v6  ;;  %p1553_p13 = pnand %p1552_p12, %p1759_p4  ;;  %p1560_p3 = por %p1559_p2, %p1558_p1 }
  0x29   : > { %1277 = vmatprep.subr.bf16.mxu0 %v1533_v7 }
  0x2a   : > { %p1554_p0 = pneg %p1553_p13 }
  0x2c   : > { %1278 = vmatpush3.bf16.msra.mxu0 %v1533_v7  ;;  %p1561_p5 = pnand %p1560_p3, %p1554_p0 }
  0x2d   : > { %1279 = vmatprep.subr.bf16.mxu0 %v1534_v8 }
  0x30   : > { %1280 = vmatpush3.bf16.msra.mxu0 %v1534_v8 }
  0x31   : > { %1439 = vmatprep.subr.bf16.mxu0 %v1664_v25 }
  0x33   : > { %1282 = vmatmul.mubr.bf16.vlgmr.msra.gmra.mrb[0].mxu0 %v1536_v9 }
  0x34   : > { %1285 = vmatprep.mubr.bf16.mxu0 %v1537_v10 }
  0x3b   : > { %1286 = vmatmul.mubr.bf16.gmra.mrb[4].mxu0 %v1538_v11 }
  0x3c   : > { %1289 = vmatprep.mubr.bf16.mxu0 %v1539_v12 }
  0x43   : > { %1290 = vmatmul.mubr.bf16.gmra.mrb[8].mxu0 %v1540_v13 }
  0x44   : > { %1293 = vmatprep.mubr.bf16.mxu0 %v1541_v14 }
  0x4b   : > { %1294 = vmatmul.mubr.bf16.gmra.mrb[12].mxu0 %v1542_v15 }
  0x4c   : > { %1297 = vmatprep.mubr.bf16.mxu0 %v1543_v16 }
  0x53   : > { %1298 = vmatmul.mubr.bf16.gmra.mrb[16].mxu0 %v1544_v17 }
  0x54   : > { %1301 = vmatprep.mubr.bf16.mxu0 %v1545_v18 }
  0x5b   : > { %1302 = vmatmul.mubr.bf16.gmra.mrb[20].mxu0 %v1546_v19 }
  0x5c   : > { %1305 = vmatprep.mubr.bf16.mxu0 %v1547_v20 }
  0x63   : > { %1306 = vmatmul.mubr.bf16.gmra.mrb[24].mxu0 %v1548_v21 }
  0x64   : > { %1309 = vmatprep.mubr.bf16.mxu0 %v1549_v22 }
  0x6b   : > { %1310 = vmatmul.mubr.bf16.gmra.mrb[28].mxu0 %v1550_v23 }
 0x106   : > { %v1283_v27 = vpop.f32.mrb[0].mxu0 }
 0x107   : > { %v609_v28 = vadd.f32 %v1283_v27, %v1825_v26  ;;  %v600_v29 = vpop.f32.mrb[1].mxu0 }
 0x108   : > { %v601_v30 = vadd.f32 %v1825_v26, %v600_v29  ;;  %v1284_v31 = vpop.f32.mrb[2].mxu0 }
 0x109   : > { %v612_v32 = vadd.f32 %v1284_v31, %v1825_v26  ;;  %v603_v33 = vpop.f32.mrb[3].mxu0  ;;  %v729_v35 = vmax.f32 %v609_v28, 0.0 }
 0x10a   : > { %v604_v34 = vadd.f32 %v1825_v26, %v603_v33  ;;  %v727_v37 = vmax.f32 %v601_v30, 0.0 }
 0x10b   : > { %v730_v36 = vmax.f32 %v612_v32, 0.0 }
 0x10c   : > { %v728_v38 = vmax.f32 %v604_v34, 0.0 }
 0x10d   : > { %v1831_v39 = vpack.c.bf16 %v730_v36, %v729_v35 }
 0x10e   : > { %v1287_v40 = vpop.f32.mrb[4].mxu0  ;;  %v1833_v41 = vpack.c.bf16 %v728_v38, %v727_v37 }
 0x10f   : > { %v625_v42 = vadd.f32 %v1287_v40, %v1825_v26  ;;  %v616_v43 = vpop.f32.mrb[5].mxu0 }
 0x110   : > { %v617_v44 = vadd.f32 %v1825_v26, %v616_v43  ;;  %v1288_v45 = vpop.f32.mrb[6].mxu0 }
 0x111   : > { %v628_v46 = vadd.f32 %v1288_v45, %v1825_v26  ;;  %v619_v47 = vpop.f32.mrb[7].mxu0  ;;  %v733_v49 = vmax.f32 %v625_v42, 0.0 }
 0x112   : > { %v620_v48 = vadd.f32 %v1825_v26, %v619_v47  ;;  %v731_v51 = vmax.f32 %v617_v44, 0.0 }
 0x113   : > { %v734_v50 = vmax.f32 %v628_v46, 0.0 }
 0x114   : > { %v732_v52 = vmax.f32 %v620_v48, 0.0 }
 0x115   : > { %v1839_v53 = vpack.c.bf16 %v734_v50, %v733_v49 }
 0x116   : > { %v1841_v54 = vpack.c.bf16 %v732_v52, %v731_v51  ;;  %v1291_v55 = vpop.f32.mrb[8].mxu0 }
 0x117   : > { %v641_v56 = vadd.f32 %v1291_v55, %v1825_v26  ;;  %v632_v57 = vpop.f32.mrb[9].mxu0 }
 0x118   : > { %v633_v58 = vadd.f32 %v1825_v26, %v632_v57  ;;  %v1292_v59 = vpop.f32.mrb[10].mxu0 }
 0x119   : > { %v644_v60 = vadd.f32 %v1292_v59, %v1825_v26  ;;  %v635_v61 = vpop.f32.mrb[11].mxu0  ;;  %v737_v63 = vmax.f32 %v641_v56, 0.0 }
 0x11a   : > { %v636_v62 = vadd.f32 %v1825_v26, %v635_v61  ;;  %v735_v1 = vmax.f32 %v633_v58, 0.0 }
 0x11b   : > { %v738_v0 = vmax.f32 %v644_v60, 0.0 }
 0x11c   : > { %v736_v2 = vmax.f32 %v636_v62, 0.0 }
 0x11d   : > { %v1847_v3 = vpack.c.bf16 %v738_v0, %v737_v63 }
 0x11e   : > { %v1849_v4 = vpack.c.bf16 %v736_v2, %v735_v1  ;;  %v1295_v5 = vpop.f32.mrb[12].mxu0 }
 0x11f   : > { %v657_v6 = vadd.f32 %v1295_v5, %v1825_v26  ;;  %v648_v7 = vpop.f32.mrb[13].mxu0 }
 0x120   : > { %v649_v8 = vadd.f32 %v1825_v26, %v648_v7  ;;  %v1296_v9 = vpop.f32.mrb[14].mxu0 }
 0x121   : > { %v660_v10 = vadd.f32 %v1296_v9, %v1825_v26  ;;  %v651_v11 = vpop.f32.mrb[15].mxu0  ;;  %v741_v13 = vmax.f32 %v657_v6, 0.0 }
 0x122   : > { %v652_v12 = vadd.f32 %v1825_v26, %v651_v11  ;;  %v739_v15 = vmax.f32 %v649_v8, 0.0 }
 0x123   : > { %v742_v14 = vmax.f32 %v660_v10, 0.0 }
 0x124   : > { %v740_v16 = vmax.f32 %v652_v12, 0.0 }
 0x125   : > { %v1855_v17 = vpack.c.bf16 %v742_v14, %v741_v13 }
 0x126   : > { %v1857_v18 = vpack.c.bf16 %v740_v16, %v739_v15  ;;  %v1299_v19 = vpop.f32.mrb[16].mxu0  ;;  %v836_v16 = vld [vmem:[%s2091_s3] sm:$0xff] }
 0x127   : > { %v673_v20 = vadd.f32 %v1299_v19, %v1825_v26  ;;  %v664_v21 = vpop.f32.mrb[17].mxu0 }
 0x128   : > { %v665_v22 = vadd.f32 %v1825_v26, %v664_v21  ;;  %v1300_v23 = vpop.f32.mrb[18].mxu0 }
 0x129   : > { %v676_v27 = vadd.f32 %v1300_v23, %v1825_v26  ;;  %v667_v28 = vpop.f32.mrb[19].mxu0  ;;  %v745_v30 = vmax.f32 %v673_v20, 0.0  ;;  %v841_v20 = vld [vmem:[%s2091_s3 + $0x28] sm:$0xff] }
 0x12a   : > { %v668_v29 = vadd.f32 %v1825_v26, %v667_v28  ;;  %v743_v32 = vmax.f32 %v665_v22, 0.0  ;;  %v843_v22 = vld [vmem:[%s2091_s3 + $0x38] sm:$0xff]  ;;  %v845_v28 = vld [vmem:[%s2091_s3 + $0x48] sm:$0xff] }
 0x12b   : > { %v746_v31 = vmax.f32 %v676_v27, 0.0  ;;  %v844_v27 = vld [vmem:[%s2091_s3 + $0x40] sm:$0xff] }
 0x12c   : > { %v744_v33 = vmax.f32 %v668_v29, 0.0  ;;  %v1428_v29 = vpack.c.bf16 %v845_v28, %v844_v27 }
 0x12d   : > { %v1387_v34 = vpack.c.bf16 %v746_v31, %v745_v30  ;;  %v1665_v30 = vmov 0.0   ;;  %v846_v31 = vld [vmem:[%s2091_s3 + $0x50] sm:$0xff] }
 0x12e   : > { %v1303_v35 = vpop.f32.mrb[20].mxu0  ;;  %v1383_v36 = vpack.c.bf16 %v744_v33, %v743_v32  ;;  %366 = vst [vmem:[#allocation2] sm:$0x1] %v1665_v30  ;;  %v847_v32 = vld [vmem:[%s2091_s3 + $0x58] sm:$0xff]  ;;  %1380 = vmatprep.mubr.msk.f32.mxu0 %vm1666_vm0, %v1665_v30 }
 0x12f   : > { %v689_v37 = vadd.f32 %v1303_v35, %v1825_v26  ;;  %v680_v38 = vpop.f32.mrb[21].mxu0  ;;  %v1431_v33 = vpack.c.bf16 %v847_v32, %v846_v31  ;;  %v849_v35 = vld [vmem:[%s2091_s3 + $0x68] sm:$0xff] }
 0x130   : > { %v681_v40 = vadd.f32 %v1825_v26, %v680_v38  ;;  %v1304_v42 = vpop.f32.mrb[22].mxu0  ;;  %1384 = vmatprep.subr.bf16.mxu1 %v1383_v36  ;;  %v851_v38 = vld [vmem:[%s2091_s3 + $0x78] sm:$0xff] }
 0x131   : > { %v692_v43 = vadd.f32 %v1304_v42, %v1825_v26  ;;  %v683_v44 = vpop.f32.mrb[23].mxu0  ;;  %1386 = vmatpush3.bf16.msra.mxu1 %v1833_v41  ;;  %v749_v46 = vmax.f32 %v689_v37, 0.0  ;;  %v850_v37 = vld [vmem:[%s2091_s3 + $0x70] sm:$0xff]  ;;  %v927_v42 = vld [vmem:[%s2094_s6] sm:$0xff] }
 0x132   : > { %v684_v45 = vadd.f32 %v1825_v26, %v683_v44  ;;  %1388 = vmatprep.subr.bf16.mxu1 %v1387_v34  ;;  %v747_v48 = vmax.f32 %v681_v40, 0.0  ;;  %v848_v34 = vld [vmem:[%s2091_s3 + $0x60] sm:$0xff]  ;;  %v1437_v40 = vpack.c.bf16 %v851_v38, %v850_v37  ;;  %v929_v44 = vld [vmem:[%s2094_s6 + $0x10] sm:$0xff] }
 0x133   : > { %v750_v47 = vmax.f32 %v692_v43, 0.0  ;;  %v1434_v36 = vpack.c.bf16 %v849_v35, %v848_v34  ;;  %v928_v43 = vld [vmem:[%s2094_s6 + $0x8] sm:$0xff] }
 0x134   : > { %v748_v49 = vmax.f32 %v684_v45, 0.0  ;;  %v1440_v45 = vpack.c.bf16 %v928_v43, %v927_v42 }
 0x135   : > { %v1395_v50 = vpack.c.bf16 %v750_v47, %v749_v46  ;;  %1390 = vmatpush3.bf16.msra.mxu1 %v1831_v39  ;;  %v930_v46 = vld [vmem:[%s2094_s6 + $0x18] sm:$0xff] }
 0x136   : > { %v1391_v51 = vpack.c.bf16 %v748_v49, %v747_v48  ;;  %v1307_v52 = vpop.f32.mrb[24].mxu0  ;;  %1441 = vmatpush3.bf16.msra.mxu0 %v1440_v45  ;;  %v1443_v47 = vpack.c.bf16 %v930_v46, %v929_v44  ;;  %v931_v48 = vld [vmem:[%s2094_s6 + $0x20] sm:$0xff]  ;;  %v932_v49 = vld [vmem:[%s2094_s6 + $0x28] sm:$0xff] }
 0x137   : > { %v705_v55 = vadd.f32 %v1307_v52, %v1825_v26  ;;  %v696_v56 = vpop.f32.mrb[25].mxu0  ;;  %1442 = vmatprep.subr.bf16.mxu0 %v1664_v25  ;;  %v934_v52 = vld [vmem:[%s2094_s6 + $0x38] sm:$0xff] }
 0x138   : > { %v697_v57 = vadd.f32 %v1825_v26, %v696_v56  ;;  %v1308_v58 = vpop.f32.mrb[26].mxu0  ;;  %1392 = vmatprep.subr.bf16.mxu1 %v1391_v51  ;;  %v933_v51 = vld [vmem:[%s2094_s6 + $0x30] sm:$0xff]  ;;  %v935_v56 = vld [vmem:[%s2094_s6 + $0x40] sm:$0xff] }
 0x139   : > { %v708_v41 = vadd.f32 %v1308_v58, %v1825_v26  ;;  %v699_v59 = vpop.f32.mrb[27].mxu0  ;;  %1394 = vmatpush3.bf16.msra.mxu1 %v1841_v54  ;;  %v753_v61 = vmax.f32 %v705_v55, 0.0  ;;  %v1449_v55 = vpack.c.bf16 %v934_v52, %v933_v51 }
 0x13a   : > { %v700_v60 = vadd.f32 %v1825_v26, %v699_v59  ;;  %1396 = vmatprep.subr.bf16.mxu1 %v1395_v50  ;;  %v751_v39 = vmax.f32 %v697_v57, 0.0  ;;  %1444 = vmatpush3.bf16.msra.mxu0 %v1443_v47  ;;  %v1446_v50 = vpack.c.bf16 %v932_v49, %v931_v48  ;;  %v936_v57 = vld [vmem:[%s2094_s6 + $0x48] sm:$0xff]  ;;  %v938_v59 = vld [vmem:[%s2094_s6 + $0x58] sm:$0xff] }
 0x13b   : > { %v754_v62 = vmax.f32 %v708_v41, 0.0  ;;  %1445 = vmatprep.subr.bf16.mxu0 %v1664_v25  ;;  %v1452_v58 = vpack.c.bf16 %v936_v57, %v935_v56  ;;  %v937_v41 = vld [vmem:[%s2094_s6 + $0x50] sm:$0xff] }
 0x13c   : > { %v752_v63 = vmax.f32 %v700_v60, 0.0  ;;  %v1455_v60 = vpack.c.bf16 %v938_v59, %v937_v41 }
 0x13d   : > { %v1403_v0 = vpack.c.bf16 %v754_v62, %v753_v61  ;;  %1398 = vmatpush3.bf16.msra.mxu1 %v1839_v53  ;;  %v939_v61 = vld [vmem:[%s2094_s6 + $0x60] sm:$0xff]  ;;  %v940_v62 = vld [vmem:[%s2094_s6 + $0x68] sm:$0xff] }
 0x13e   : > { %v1399_v1 = vpack.c.bf16 %v752_v63, %v751_v39  ;;  %v1311_v2 = vpop.f32.mrb[28].mxu0  ;;  %1447 = vmatpush3.bf16.msra.mxu0 %v1446_v50  ;;  %v1458_v39 = vpack.c.bf16 %v940_v62, %v939_v61  ;;  %v941_v63 = vld [vmem:[%s2094_s6 + $0x70] sm:$0xff] }
 0x13f   : > { %v721_v5 = vadd.f32 %v1311_v2, %v1825_v26  ;;  %v712_v6 = vpop.f32.mrb[29].mxu0  ;;  %1448 = vmatprep.subr.bf16.mxu0 %v1664_v25 }
 0x140   : > { %v713_v7 = vadd.f32 %v1825_v26, %v712_v6  ;;  %v1312_v8 = vpop.f32.mrb[30].mxu0  ;;  %1400 = vmatprep.subr.bf16.mxu1 %v1399_v1 }
 0x141   : > { %v724_v54 = vadd.f32 %v1312_v8, %v1825_v26  ;;  %v715_v9 = vpop.f32.mrb[31].mxu0  ;;  %1402 = vmatpush3.bf16.msra.mxu1 %v1849_v4  ;;  %v757_v11 = vmax.f32 %v721_v5, 0.0  ;;  %v759_v5 = vld [vmem:[#allocation2] sm:$0x1] }
 0x142   : > { %v716_v10 = vadd.f32 %v1825_v26, %v715_v9  ;;  %1404 = vmatprep.subr.bf16.mxu1 %v1403_v0  ;;  %v755_v53 = vmax.f32 %v713_v7, 0.0  ;;  %v837_v26 = vld [vmem:[%s2091_s3 + $0x8] sm:$0xff]  ;;  %1450 = vmatpush3.bf16.msra.mxu0 %v1449_v55  ;;  %v942_v0 = vld [vmem:[%s2094_s6 + $0x78] sm:$0xff]  ;;  %v922_v9 = vld [vmem:[%s2092_s4] sm:$0x1] }
 0x143   : > { %v758_v12 = vmax.f32 %v724_v54, 0.0  ;;  %v1416_v4 = vpack.c.bf16 %v837_v26, %v836_v16  ;;  %1451 = vmatprep.subr.bf16.mxu0 %v1664_v25  ;;  %v1461_v1 = vpack.c.bf16 %v942_v0, %v941_v63 }
 0x144   : > { %v756_v13 = vmax.f32 %v716_v10, 0.0  ;;  %v924_v10 = vld [vmem:[%s2093_s5] sm:$0x1] }
 0x145   : > { %v1411_v14 = vpack.c.bf16 %v758_v12, %v757_v11  ;;  %1406 = vmatpush3.bf16.msra.mxu1 %v1847_v3  ;;  %v838_v3 = vld [vmem:[%s2091_s3 + $0x10] sm:$0xff] }
 0x146   : > { %v1407_v15 = vpack.c.bf16 %v756_v13, %v755_v53  ;;  %1453 = vmatpush3.bf16.msra.mxu0 %v1452_v58 }
 0x147   : > { %1454 = vmatprep.subr.bf16.mxu0 %v1664_v25 }
 0x148   : > { %1408 = vmatprep.subr.bf16.mxu1 %v1407_v15 }
 0x149   : > { %1410 = vmatpush3.bf16.msra.mxu1 %v1857_v18  ;;  %v839_v18 = vld [vmem:[%s2091_s3 + $0x18] sm:$0xff] }
 0x14a   : > { %1412 = vmatprep.subr.bf16.mxu1 %v1411_v14  ;;  %v1419_v19 = vpack.c.bf16 %v839_v18, %v838_v3  ;;  %1456 = vmatpush3.bf16.msra.mxu0 %v1455_v60 }
 0x14b   : > { %1457 = vmatprep.subr.bf16.mxu0 %v1664_v25 }
 0x14d   : > { %1414 = vmatpush3.bf16.msra.mxu1 %v1855_v17  ;;  %v840_v17 = vld [vmem:[%s2091_s3 + $0x20] sm:$0xff] }
 0x14e   : > { %1415 = vmatprep.subr.bf16.mxu1 %v1664_v25  ;;  %v1422_v21 = vpack.c.bf16 %v841_v20, %v840_v17  ;;  %1459 = vmatpush3.bf16.msra.mxu0 %v1458_v39 }
 0x14f   : > { %1460 = vmatprep.subr.bf16.mxu0 %v1664_v25 }
 0x150   : > { %825 = vmatmul.mubr.f32.vlgmr.msra.gmra.mrb[0].mxu1 %v1663_v24  ;;  %v842_v24 = vld [vmem:[%s2091_s3 + $0x30] sm:$0xff] }
 0x151   : > { %1417 = vmatpush3.bf16.msra.mxu1 %v1416_v4  ;;  %v1425_v23 = vpack.c.bf16 %v843_v22, %v842_v24  ;;  %1345 = vmatprep.mubr.msk.f32.mxu1 %vm1666_vm0, %v1665_v30 }
 0x152   : > { %1418 = vmatprep.subr.bf16.mxu1 %v1664_v25  ;;  %1462 = vmatpush3.bf16.msra.mxu0 %v1461_v1 }
 0x155   : > { %1420 = vmatpush3.bf16.msra.mxu1 %v1419_v19 }
 0x156   : > { %1421 = vmatprep.subr.bf16.mxu1 %v1664_v25 }
 0x159   : > { %1423 = vmatpush3.bf16.msra.mxu1 %v1422_v21 }
 0x15a   : > { %1424 = vmatprep.subr.bf16.mxu1 %v1664_v25 }
 0x15d   : > { %1426 = vmatpush3.bf16.msra.mxu1 %v1425_v23 }
 0x15e   : > { %1427 = vmatprep.subr.bf16.mxu1 %v1664_v25 }
 0x161   : > { %1429 = vmatpush3.bf16.msra.mxu1 %v1428_v29 }
 0x162   : > { %1430 = vmatprep.subr.bf16.mxu1 %v1664_v25 }
 0x165   : > { %1432 = vmatpush3.bf16.msra.mxu1 %v1431_v33 }
 0x166   : > { %1433 = vmatprep.subr.bf16.mxu1 %v1664_v25 }
 0x169   : > { %1435 = vmatpush3.bf16.msra.mxu1 %v1434_v36 }
 0x16a   : > { %1436 = vmatprep.subr.bf16.mxu1 %v1664_v25 }
 0x16d   : > { %1438 = vmatpush3.bf16.msra.mxu1 %v1437_v40 }
 0x223   : > { %v1228_v2 = vpop.f32.mrb[0].mxu1 }
 0x224   : > { %v1229_v6 = vpop.f32.mrb[1].mxu1 }
 0x225   : > { %v1230_v7 = vadd.f32 %v1229_v6, %v1228_v2 }
 0x227   : > { %v830_v8 = vadd.f32 %v1230_v7, %v759_v5 }
 0x229   : > { %831 = vst [vmem:[#allocation2] sm:$0x1] %v830_v8 }
 0x230   : > { %v835_v54 = vld [vmem:[#allocation2] sm:$0x1] }
 0x231   : > { %1346 = vmatmul.mubr.f32.vlgmr.msra.gmra.mrb[2].mxu1 %v835_v54 }
 0x304   : > { %v918_v25 = vpop.f32.mrb[2].mxu1 }
 0x305   : > { %v923_v11 = vsub.f32 %v918_v25, %v922_v9  ;;  %v1347_v12 = vpop.f32.mrb[3].mxu1 }
 0x307   : > { %v925_v53 = vmul.f32 %v924_v10, %v923_v11 }
 0x309   : > { %1381 = vmatmul.mubr.f32.vlgmr.msra.gmra.mrb[32].mxu0 %v925_v53  ;;  %926 = vst [vmem:[%s352_s27] sm:$0x1] %v925_v53 }
 0x30a   : > { %1564 = shalt.err (!%p1561_p5)
}
 0x30b   : > { %s1565_s27 = scalar_lea.hbm %s2011_s16, 16  ;;  %s1569_s26 = scalar_lea.hbm %s2097_s9, 32 }
 0x30c   : > { %p1566_p6 = scmp.ne.s32.totalorder %s2011_s16, %s1565_s27  ;;  %p1570_p10 = scmp.lt.u32.totalorder %s2011_s16, %s2097_s9 }
 0x30d   : > { %p1571_p11 = scmp.lt.u32.totalorder %s1569_s26, %s1565_s27  ;;  %p1573_p13 = scmp.lt.u32.totalorder %s1565_s27, %s2011_s16 }
 0x30e   : > { %p1567_p7 = pnand %p1566_p6, %p1759_p4 }
 0x30f   : > { %p1572_p12 = por %p1571_p11, %p1570_p10 }
 0x310   : > { %p1568_p9 = pneg %p1567_p7 }
 0x311   : > { %p1574_p0 = por %p1573_p13, %p1572_p12 }
 0x313   : > { %p1575_p1 = pnand %p1574_p0, %p1568_p9 }
 0x315   : > { %1578 = shalt.err (!%p1575_p1)
}
 0x316   : > { %1464 = dma.vmem_to_hbm [thread:$0]  (%p1759_p4), %s1046_s18, 16, %s2011_s16, %s1020_s23   ;;  %v943_v13 = vld [vmem:[%s2095_s7] sm:$0x1] }
 0x317   : > { %s346_s28 = scalar_lea.vmem [#allocation3], %s1999_s20  ;;  %s2103_s27 = sshll.u32 %s1653_s12, 4 }
 0x318   : > { %s1032_s29 = sshll.u32 %s346_s28, 4  ;;  %s2040_s25 = scalar_lea.hbm %s2096_s8, %s2103_s27  ;;  %s2042_s29 = int_to_ptr.vmem [resolvable:$true] %s1032_s29 }
 0x319   : > { %s1016_s16 = scalar_lea.sflag [#allocation4], %s1999_s20  ;;  %s1579_s18 = scalar_lea.vmem %s2042_s29, 16 }
 0x31a   : > { %p1580_p2 = scmp.ne.s32.totalorder %s2042_s29, %s1579_s18  ;;  %s1668_s23 = smov [#allocation3]  }
 0x31b   : > { %s1583_s0 = sshll.u32 %s1668_s23, 4  ;;  %s1584_s0 = int_to_ptr.vmem [resolvable:$false] %s1583_s0 }
 0x31c   : > { %p1581_p3 = pnand %p1580_p2, %p1759_p4  ;;  %s1585_s12 = scalar_lea.vmem %s1584_s0, 32 }
 0x31d   : > { %p1586_p6 = scmp.lt.s32.totalorder %s2042_s29, %s1584_s0  ;;  %p1587_p7 = scmp.lt.s32.totalorder %s1585_s12, %s1579_s18 }
 0x31e   : > { %p1582_p5 = pneg %p1581_p3 }
 0x31f   : > { %p1588_p9 = por %p1587_p7, %p1586_p6 }
 0x321   : > { %p1589_p10 = pnand %p1588_p9, %p1582_p5 }
 0x3dc   : > { %v1010_v14 = vpop.f32.mrb[32].mxu0 }
 0x3dd   : > { %v1011_v15 = vadd.f32 %v1010_v14, %v943_v13  ;;  %v1382_v16 = vpop.f32.mrb[33].mxu0 }
 0x3df   : > { %1014 = vst [vmem:[%s346_s28] sm:$0x1] %v1011_v15 }
 0x3e0   : > { %1592 = shalt.err (!%p1589_p10)
}
 0x3e1   : > { %s1593_s20 = scalar_lea.hbm %s2040_s25, 16  ;;  %s1597_s27 = scalar_lea.hbm %s2096_s8, 32 }
 0x3e2   : > { %p1594_p11 = scmp.ne.s32.totalorder %s2040_s25, %s1593_s20  ;;  %p1598_p0 = scmp.lt.u32.totalorder %s2040_s25, %s2096_s8 }
 0x3e3   : > { %p1599_p1 = scmp.lt.u32.totalorder %s1597_s27, %s1593_s20  ;;  %p1601_p3 = scmp.lt.u32.totalorder %s1593_s20, %s2040_s25 }
 0x3e4   : > { %p1595_p12 = pnand %p1594_p11, %p1759_p4 }
 0x3e5   : > { %p1600_p2 = por %p1599_p1, %p1598_p0 }
 0x3e6   : > { %p1596_p13 = pneg %p1595_p12 }
 0x3e7   : > { %p1602_p5 = por %p1601_p3, %p1600_p2 }
 0x3e9   : > { %p1603_p6 = pnand %p1602_p5, %p1596_p13 }
 0x3eb   : > { %1606 = shalt.err (!%p1603_p6)
}
 0x3ec   : > { %1463 = dma.vmem_to_hbm [thread:$0]  (%p1759_p4), %s2042_s29, 16, %s2040_s25, %s1016_s16  }
 0x3ed PF: > { %p1474_p7 = scmp.ge.s32.totalorder %s1661_s14, 2  ;;  %s1057_s18 = sand.u32 1, %s1641_s30  }
 0x3ee   : > { %s1058_s23 = scalar_lea.sflag [#allocation4], %s1057_s18 }
 0x3ef   : > { %p1468_p9 = pnand %p1474_p7, %p1766_p8 }
 0x3f1   : > { %1632 = dma.done.wait (!%p1468_p9), %s1058_s23, 16  }
 0x3f2   : > { %1634 = vsyncadd (!%p1468_p9), %s1058_s23, 4294967280  ;;  %s1066_s0 = scalar_lea.sflag [#allocation6], %s1057_s18 }
 0x3f3   : > { %1636 = dma.done.wait (!%p1468_p9), %s1066_s0, 16  }
 0x3f4   : > { %1638 = vsyncadd (!%p1468_p9), %s1066_s0, 4294967280  ;;  %s26_s14 = sadd.s32 1, %s1661_s14   ;;  %s2104_s30 = smov %s1645_s10 }
 0x3f5   : > { %p23_p10 = scmp.ge.s32.totalorder %s26_s14, 4   ;;  %s2105_s10 = smov %s1649_s11 }
 0x3f6   : > { %s2106_s11 = smov %s1772_s22  ;;  %s2107_s12 = smov %s1657_s13 }
 0x3f7   : > { %s2108_s13 = smov %s2110_s17  ;;  %25 = sbr.rel (!%p23_p10) target bundleno = 8 (0x8), region = 112 }
 0x3fe   :  { %1070 = vsyncpa [#allocation4], 1 }
 0x3ff   :  { %1072 = vsyncpa [#allocation4 + $0x1], 1 }
 0x400   :  { %1073 = vsyncpa [#allocation6], 1 }
 0x401   :  { %1075 = vsyncpa [#allocation6 + $0x1], 1 }

</bundles_post_ra>
